<compile_context>
chip_gen: v7x
topology: tpu7x:2x2x1
jax: 0.10.0
libtpu: 0.0.40
codegen_flags: <defaults>
</compile_context>

<pallas_src>
import jax
import jax.numpy as jnp
from jax.experimental import pallas as pl
from jax.experimental.pallas import tpu as pltpu


_LANE = 128
_TILE_BYTES = 4 * 1024 * 1024          # ~4 MiB per input tile (best on v7x; fine elsewhere)
_VMEM_LIMIT_BYTES = 32 * 1024 * 1024   # in+out double-buffered 4 MiB tiles (~16 MiB) + headroom;
                                       # well under physical VMEM on v5e/v6e (128 MiB) and v7x (64 MiB)


def _relu_kernel(x_ref, o_ref):
    # Pure VPU elementwise max against a weak-typed scalar 0 (keeps input dtype).
    o_ref[...] = jnp.maximum(x_ref[...], 0)


def _sublane(dtype) -> int:
    """Sublane packing granularity: 8 for 4-byte, 16 for 2-byte, 32 for 1-byte dtypes."""
    return max(8, 32 // jnp.dtype(dtype).itemsize)


def _choose_cols(total: int, target: int = 1024) -> int:
    """Largest multiple of 128 <= `target` that divides `total`; 0 if none exists."""
    for c in range(target, _LANE - 1, -_LANE):
        if total % c == 0:
            return c
    return 0


def _choose_rows(rows: int, sub: int, row_bytes: int) -> int:
    """Tile rows: multiple of `sub` (or the full extent), ~_TILE_BYTES per tile,
    and at least 2 grid steps whenever possible so v7x's second TensorCore gets work."""
    if rows <= sub:
        return rows                                          # full extent (tiny input)
    target = max(sub, (_TILE_BYTES // row_bytes) // sub * sub)
    tr = min(target, (rows // sub) * sub)
    if pl.cdiv(rows, tr) < 2:                                 # megacore: split into >= 2 tiles
        half = -(-rows // 2)
        tr = max(sub, -(-half // sub) * sub)
    return tr


def _relu_2d(x2d: jax.Array) -> jax.Array:
    """Tiled, software-pipelined elementwise ReLU over a lane-dense (rows, cols) slab."""
    rows, cols = x2d.shape
    itemsize = jnp.dtype(x2d.dtype).itemsize
    tr = _choose_rows(rows, _sublane(x2d.dtype), cols * itemsize)
    grid = (pl.cdiv(rows, tr),)                               # 1-D grid: tc == cols always
    return pl.pallas_call(
        _relu_kernel,
        out_shape=jax.ShapeDtypeStruct(x2d.shape, x2d.dtype),
        grid=grid,
        in_specs=[pl.BlockSpec((tr, cols), lambda i: (i, 0))],
        out_specs=pl.BlockSpec((tr, cols), lambda i: (i, 0)),
        compiler_params=pltpu.CompilerParams(
            dimension_semantics=("parallel",),
            vmem_limit_bytes=_VMEM_LIMIT_BYTES,
        ),
        cost_estimate=pl.CostEstimate(
            flops=rows * cols,
            transcendentals=0,
            bytes_accessed=2 * rows * cols * itemsize,
        ),
    )(x2d)


def _relu_small(v: jax.Array) -> jax.Array:
    """Whole-array (no grid) call for tiny 1-D remainders (< 128 elements)."""
    return pl.pallas_call(
        _relu_kernel,
        out_shape=jax.ShapeDtypeStruct(v.shape, v.dtype),
    )(v)


def relu(x: jax.Array) -> jax.Array:
    """Elementwise ReLU via a tiled, pipelined Pallas TPU kernel."""
    orig_shape = x.shape
    if x.size == 0:
        return x
    flat = x.reshape(-1)              # contiguous reshape: no HBM copy
    total = flat.size

    cols = _choose_cols(total)
    if cols:
        # Fast path (covers essentially all real activation shapes): one lane-dense
        # 2-D pallas_call, no padding, no post-slice -> ~2N bytes of HBM traffic.
        out2d = _relu_2d(flat.reshape(total // cols, cols))
        return out2d.reshape(orig_shape)

    # Ragged fallback: `total` has no multiple-of-128 divisor.  Run the 128-aligned
    # prefix through the same 2-D kernel (partial last row-block handled by the grid)
    # and the < 128-element remainder through a tiny whole-array call, instead of the
    # old full-array pad + slice round trips.
    main = (total // _LANE) * _LANE
    if main == 0:
        out_flat = _relu_small(flat)
    else:
        head = _relu_2d(flat[:main].reshape(main // _LANE, _LANE)).reshape(-1)
        tail = _relu_small(flat[main:])
        out_flat = jnp.concatenate([head, tail])
    return out_flat.reshape(orig_shape)


if __name__ == "__main__":
    key = jax.random.PRNGKey(0)
    # NCHW input consistent with a conv-style activation: batch=2, channels=4, 16x16 spatial.
    x = jax.random.normal(key, (2, 4, 16, 16), dtype=jnp.float32)

    y = relu(x)
    jax.block_until_ready(y)

    # Correctness check against plain JAX reference.
    y_ref = jnp.maximum(x, 0.0)
    assert y.shape == x.shape and y.dtype == x.dtype
    assert jnp.allclose(y, y_ref), "Pallas ReLU mismatch vs reference"

    print("KERNEL_OK")
</pallas_src>

<mosaic_0001>
module attributes {stable_mosaic.version = 11 : i64} {
  func.func @_relu_kernel(%arg0: i32, %arg1: memref<2x1024xf32, #tpu.memory_space<vmem>>, %arg2: memref<2x1024xf32, #tpu.memory_space<vmem>>) attributes {dimension_semantics = [#tpu.dimension_semantics<parallel>], iteration_bounds = array<i64: 1>, scalar_prefetch = 0 : i64, scratch_operands = 0 : i64, tpu.core_type = #tpu.core_type<tc>, window_params = [{transform_indices = @transform_0, window_bounds = array<i64: 2, 1024>}, {transform_indices = @transform_1, window_bounds = array<i64: 2, 1024>}]} {
    %c0 = arith.constant 0 : index
    %c0_0 = arith.constant 0 : index
    %0 = vector.load %arg1[%c0, %c0_0] : memref<2x1024xf32, #tpu.memory_space<vmem>>, vector<2x1024xf32>
    %cst = arith.constant 0.000000e+00 : f32
    %1 = vector.broadcast %cst : f32 to vector<2x1024xf32>
    %2 = arith.maximumf %0, %1 : vector<2x1024xf32>
    %c0_1 = arith.constant 0 : index
    %c0_2 = arith.constant 0 : index
    %3 = vector.load %arg2[%c0_1, %c0_2] : memref<2x1024xf32, #tpu.memory_space<vmem>>, vector<2x1024xf32>
    tpu.vector_store %arg2[%c0_1, %c0_2], %2 {strides = array<i32>} : memref<2x1024xf32, #tpu.memory_space<vmem>>, vector<2x1024xf32>,
    return
  }
  func.func @transform_0(%arg0: i32) -> (i32, i32) {
    %c0_i32 = arith.constant 0 : i32
    %c0_i32_0 = arith.constant 0 : i32
    return %arg0, %c0_i32 : i32, i32
  }
  func.func @transform_1(%arg0: i32) -> (i32, i32) {
    %c0_i32 = arith.constant 0 : i32
    %c0_i32_0 = arith.constant 0 : i32
    return %arg0, %c0_i32 : i32, i32
  }
}

</mosaic_0001>

<bundles_post_ra>
// kernel: tpu_custom_call.1
= control target key start
LH: loop header
LB: loop body
LE: loop exit
PB: predicated region body
PF: predicated region fallthrough
CT: control target
= control target key end

     0   :  { %6 = vsyncpa [#allocation3], 0  ;;  %s128_s0 = inlined_call_operand.hbm [shape: f32[2,1024], index: 0, kind: input, shape index: {}]   ;;  %s129_s1 = inlined_call_operand.hbm [shape: f32[2,1024], index: 1, kind: output, shape index: {}]  }
   0x1   :  { %7 = vsyncpa [#allocation4], 0  ;;  %s92_s6 = smov [#allocation2]   ;;  %s44_s10 = scalar_lea.hbm %s128_s0, 256 }
   0x2   :  { %s14_s7 = sshll.u32 %s92_s6, 4  ;;  %p45_p0 = scmp.ne.s32.totalorder %s128_s0, %s44_s10  ;;  %s15_s7 = int_to_ptr.vmem [resolvable:$true] %s14_s7 }
   0x3   :  { %p48_p1 = scmp.lt.u32.totalorder %s44_s10, %s128_s0 }
   0x5   :  { %p50_p2 = pnand %p48_p1, %p45_p0 }
   0x7   :  { %53 = shalt.err (!%p50_p2)
}
   0x8   :  { %s54_s15 = scalar_lea.vmem %s15_s7, 256  ;;  %p59_p4 = scmp.lt.s32.totalorder %s15_s7, %s15_s7 }
   0x9   :  { %p55_p3 = scmp.ne.s32.totalorder %s15_s7, %s54_s15  ;;  %p60_p5 = scmp.lt.s32.totalorder %s54_s15, %s54_s15 }
   0xb   :  { %p61_p6 = por %p60_p5, %p59_p4 }
   0xd   :  { %p62_p7 = pnand %p61_p6, %p55_p3 }
   0xf   :  { %65 = shalt.err (!%p62_p7)
}
  0x10   :  { %17 = dma.hbm_to_vmem [thread:$0]  %s128_s0, 256, %s15_s7, [#allocation3]  }
  0x11   :  { %88 = dma.done.wait [#allocation3], 256  }
  0x12   :  { %89 = vsyncadd [#allocation3], 4294967040  ;;  %s93_s18 = smov [#allocation5]   ;;  %v21_v0 = vld [vmem:[#allocation2] sm:$0xff]  ;;  %v22_v1 = vld [vmem:[#allocation2 + $0x8] sm:$0xff] }
  0x13   :  { %s33_s19 = sshll.u32 %s93_s18, 4  ;;  %v23_v2 = vmax.f32 %v21_v0, 0.0  ;;  %v24_v3 = vmax.f32 %v22_v1, 0.0  ;;  %s34_s19 = int_to_ptr.vmem [resolvable:$true] %s33_s19 }
  0x14   :  { %s66_s20 = scalar_lea.vmem %s34_s19, 256  ;;  %p71_p9 = scmp.lt.s32.totalorder %s34_s19, %s34_s19 }
  0x15   :  { %25 = vst [vmem:[#allocation5] sm:$0xff] %v23_v2  ;;  %26 = vst [vmem:[#allocation5 + $0x8] sm:$0xff] %v24_v3  ;;  %p67_p8 = scmp.ne.s32.totalorder %s34_s19, %s66_s20  ;;  %p72_p10 = scmp.lt.s32.totalorder %s66_s20, %s66_s20 }
  0x17   :  { %p73_p11 = por %p72_p10, %p71_p9 }
  0x19   :  { %p74_p12 = pnand %p73_p11, %p67_p8 }
  0x1b   :  { %77 = shalt.err (!%p74_p12)
}
  0x1c   :  { %s78_s22 = scalar_lea.hbm %s129_s1, 256 }
  0x1d   :  { %p79_p13 = scmp.ne.s32.totalorder %s129_s1, %s78_s22  ;;  %p82_p0 = scmp.lt.u32.totalorder %s78_s22, %s129_s1 }
  0x1f   :  { %p84_p1 = pnand %p82_p0, %p79_p13 }
  0x21   :  { %87 = shalt.err (!%p84_p1)
}
  0x22   :  { %36 = dma.vmem_to_hbm [thread:$0]  %s34_s19, 256, %s129_s1, [#allocation4]  }
  0x23   :  { %90 = dma.done.wait [#allocation4], 256  }
  0x24   :  { %91 = vsyncadd [#allocation4], 4294967040 }
  0x25   :  { %40 = vsyncpa [#allocation3], 1 }
  0x26   :  { %41 = vsyncpa [#allocation4], 1 }

</bundles_post_ra>
